<compile_context>
chip_gen: v7x
topology: tpu7x:2x2x1
jax: 0.10.0
libtpu: 0.0.40
codegen_flags: <defaults>
</compile_context>

<pallas_src>
import jax
import jax.numpy as jnp
import numpy as np
from jax.experimental import pallas as pl
from jax.experimental.pallas import tpu as pltpu

# ----------------------------- configuration ------------------------------ #
INPUT_DIM = 32
OUTPUT_DIM = 32
NUM_EXPERTS = 64
PRODUCT_KEY_DIM = (8, 8)          # product of dims == NUM_EXPERTS
NUM_EXPERTS_PER_TOK = 4
NUM_HEADS = 2
EXPERT_HIDDEN = 1
QUERY_DIM = 16                    # divisible by len(PRODUCT_KEY_DIM)
NORM_KEYS = True
NORM_QUERY = True
BATCH_NORM_QUERY = True
BN_EPS = 1e-5
L2_EPS = 1e-12
INV_SQRT2 = 0.7071067811865476
GELU_C = 0.7978845608028654       # sqrt(2/pi)
MAX_TOKEN_TILE = 1024             # kernel-B token tile cap (VMEM-budget based)

HIGHEST = jax.lax.Precision.HIGHEST


# ------------------------------ Pallas kernels ----------------------------- #
def make_fused_query_score_kernel(batch_norm_query, norm_query):
    """Fused: x @ Wq + b -> BatchNorm(batch stats pooled over heads) -> per-chunk L2
    scaling -> block-diagonal sub-key scores -> product-key combine.

    x     : [N, Din]
    wq    : [Din, H*Q]        bq     : [1, H*Q]
    kbd   : [H*Q, H*Dtot]     (pre-normalized sub-keys, block-diagonal per (head, dim))
    pool  : [H*Q, H*Q]        (BN head-pooling indicator / H)
    cind  : [H*Q, H*ndims]    (per-chunk sum-of-squares indicator)
    exp   : [H*ndims, H*Dtot] (per-chunk scale expansion indicator)
    comb  : [H*Dtot, H*NE]    (product-key outer-sum combine indicator)
    out   : [N, H*NE]         combined scores over all experts
    """

    def kernel(x_ref, wq_ref, bq_ref, kbd_ref, pool_ref, cind_ref, exp_ref,
               comb_ref, out_ref):
        # Query projection (default MXU precision, f32 accumulation).
        q = jnp.dot(x_ref[...], wq_ref[...],
                    preferred_element_type=jnp.float32) + bq_ref[...]        # [N, HQ]

        if batch_norm_query:
            # BN statistics over the flattened (N*H, Q) batch: per-column stats pooled
            # across head column groups via a lane-dense indicator matmul (MXU).
            col_mean = jnp.mean(q, axis=0, keepdims=True)                    # [1, HQ]
            bc_mean = jnp.dot(col_mean, pool_ref[...], precision=HIGHEST,
                              preferred_element_type=jnp.float32)            # [1, HQ]
            qc = q - bc_mean
            col_var = jnp.mean(qc * qc, axis=0, keepdims=True)               # [1, HQ]
            bc_var = jnp.dot(col_var, pool_ref[...], precision=HIGHEST,
                             preferred_element_type=jnp.float32)             # [1, HQ]
            q = qc * jax.lax.rsqrt(bc_var + BN_EPS)

        # Raw block-diagonal sub-key scores (keys are pre-normalized in the wrapper).
        # HIGHEST precision keeps top-k selection numerically stable (tiny matmul).
        s_raw = jnp.dot(q, kbd_ref[...], precision=HIGHEST,
                        preferred_element_type=jnp.float32)                  # [N, HDtot]

        if norm_query:
            # Per-(head, product-dim) L2 scale applied to the score columns: segmented
            # sum-of-squares + expansion as two small indicator matmuls (MXU), no
            # sub-vreg lane slices / concatenates.
            ssq = jnp.dot(q * q, cind_ref[...], precision=HIGHEST,
                          preferred_element_type=jnp.float32)                # [N, Hnd]
            inv = 1.0 / jnp.maximum(jnp.sqrt(ssq), L2_EPS)
            scale = jnp.dot(inv, exp_ref[...], precision=HIGHEST,
                            preferred_element_type=jnp.float32)              # [N, HDtot]
            s_raw = s_raw * scale

        # Product-key outer-sum combine: one lane-dense matmul against the 0/1 combine
        # indicator produces the full [N, H*NUM_EXPERTS] score tensor.
        out_ref[...] = jnp.dot(s_raw, comb_ref[...], precision=HIGHEST,
                               preferred_element_type=jnp.float32)           # [N, HNE]

    return kernel


def make_expert_mix_kernel(num_slots, expert_hidden, ne_eh):
    """Expert MLP + gated mixture with the expert tables resident in VMEM.

    x    : [T, Din]
    idx  : [T, H*K]   int32 selected expert ids
    gate : [T, H*K]   softmax gate per slot
    down : [Din, NE*Eh]   (transposed expert_down table)
    up   : [NE*Eh, Dout]
    o    : [T, Dout]
    """

    def kernel(x_ref, idx_ref, gate_ref, down_ref, up_ref, o_ref):
        x = x_ref[...]                                                       # [T, Din]
        idx = idx_ref[...]                                                   # [T, HK]
        gate = gate_ref[...]                                                 # [T, HK]
        t = x.shape[0]

        # Dense pre-activation for every (expert, hidden) pair on the MXU.
        proj = jnp.dot(x, down_ref[...],
                       preferred_element_type=jnp.float32)                   # [T, NEEh]

        # tanh-approx GELU (single EUP op).
        act = 0.5 * proj * (1.0 + jnp.tanh(
            GELU_C * (proj + 0.044715 * proj * proj * proj)))

        # Scatter per-slot gates onto the expert lanes (lane-dense compare + add).
        lane = jax.lax.broadcasted_iota(jnp.int32, (t, ne_eh), 1)
        lane_expert = lane // expert_hidden if expert_hidden > 1 else lane
        w = jnp.zeros((t, ne_eh), jnp.float32)
        for j in range(num_slots):
            w = w + jnp.where(lane_expert == idx[:, j:j + 1],
                              gate[:, j:j + 1], 0.0)

        # Weighted reduction back to the output dim on the MXU.
        o_ref[...] = jnp.dot(w * act, up_ref[...],
                             preferred_element_type=jnp.float32)             # [T, Dout]

    return kernel


# ------------------------------ wrappers ----------------------------------- #
def _round_up(x, m):
    return (x + m - 1) // m * m


def _build_score_constants(sub_keys):
    """Pre-normalized block-diagonal keys + the 0/1 indicator matrices used by
    kernel A (all built once in numpy)."""
    ndims = len(PRODUCT_KEY_DIM)
    chunk = QUERY_DIM // ndims
    h, q = NUM_HEADS, QUERY_DIM
    dims = list(PRODUCT_KEY_DIM)
    dtot = int(sum(dims))
    ne = NUM_EXPERTS
    offs = np.concatenate([[0], np.cumsum(dims)]).astype(np.int64)

    normed = []
    for k in sub_keys:
        k = np.asarray(k, np.float32)
        if NORM_KEYS:
            k = k / np.maximum(np.linalg.norm(k, axis=-1, keepdims=True), L2_EPS)
        normed.append(k)

    kbd = np.zeros((h * q, h * dtot), np.float32)
    for hh in range(h):
        for i, kn in enumerate(normed):
            r0 = hh * q + i * chunk
            c0 = hh * dtot + int(offs[i])
            kbd[r0:r0 + chunk, c0:c0 + dims[i]] = kn.T

    # BN head pooling of per-column stats.
    pool = np.zeros((h * q, h * q), np.float32)
    for r in range(h * q):
        for c in range(h * q):
            if r % q == c % q:
                pool[r, c] = 1.0 / h

    # Per-(head, product-dim) chunk sum-of-squares indicator.
    cind = np.zeros((h * q, h * ndims), np.float32)
    for hh in range(h):
        for i in range(ndims):
            cind[hh * q + i * chunk: hh * q + (i + 1) * chunk, hh * ndims + i] = 1.0

    # Expand per-chunk scales to the score columns.
    exp = np.zeros((h * ndims, h * dtot), np.float32)
    for hh in range(h):
        for i in range(ndims):
            exp[hh * ndims + i,
                hh * dtot + int(offs[i]): hh * dtot + int(offs[i + 1])] = 1.0

    # Product-key outer-sum combine (flat expert index = row-major over product dims,
    # matching the reference / PyTorch meshgrid 'ij' flattening).
    strides = np.ones(ndims, np.int64)
    for d in range(ndims - 2, -1, -1):
        strides[d] = strides[d + 1] * dims[d + 1]
    comb = np.zeros((h * dtot, h * ne), np.float32)
    for hh in range(h):
        for flat in range(ne):
            rem = flat
            for d in range(ndims):
                i_d = rem // int(strides[d])
                rem = rem % int(strides[d])
                comb[hh * dtot + int(offs[d]) + i_d, hh * ne + flat] = 1.0

    return (jnp.asarray(kbd), jnp.asarray(pool), jnp.asarray(cind),
            jnp.asarray(exp), jnp.asarray(comb))


def peer_forward_pallas(hidden_states, params):
    b, s, din = hidden_states.shape
    n = b * s
    h, k_top = NUM_HEADS, NUM_EXPERTS_PER_TOK
    eh, dout, ne = EXPERT_HIDDEN, OUTPUT_DIM, NUM_EXPERTS
    hk = h * k_top
    ne_eh = ne * eh

    x2d = hidden_states.reshape(n, din)

    # ---- kernel A: fused projection + BN + norm + scores + product-key combine ---- #
    kbd, pool, cind, exp_ind, comb = _build_score_constants(params["sub_keys"])
    fused = make_fused_query_score_kernel(BATCH_NORM_QUERY, NORM_QUERY)
    total = pl.pallas_call(
        fused,
        out_shape=jax.ShapeDtypeStruct((n, h * ne), jnp.float32),
        compiler_params=pltpu.CompilerParams(vmem_limit_bytes=32 * 1024 * 1024),
    )(x2d, params["wq"], params["bq"].reshape(1, -1),
      kbd, pool, cind, exp_ind, comb)                                        # [N, H*NE]

    # ---- top-k expert selection + softmax gate (plain JAX glue) ---- #
    total4 = total.reshape(b, s, h, ne)
    top_scores, top_idx = jax.lax.top_k(total4, k_top)                       # [B,S,H,K]
    gate = jax.nn.softmax(top_scores, axis=-1)

    idx2d = top_idx.reshape(n, hk).astype(jnp.int32)
    gate2d = gate.reshape(n, hk).astype(jnp.float32)

    # Expert tables, laid out for the in-kernel dense projection / reduction; they stay
    # resident in VMEM across the whole grid (no per-token gather in HBM).
    down_t = params["expert_down"].reshape(ne * eh, din).T                   # [Din, NEEh]
    up_flat = jnp.transpose(params["expert_up"].reshape(ne, dout, eh),
                            (0, 2, 1)).reshape(ne * eh, dout)                # [NEEh, Dout]

    # ---- kernel B: token-tiled expert mix (cdiv grid, padded tail, parallel) ---- #
    tile = min(MAX_TOKEN_TILE, _round_up(n, 8))
    num_tiles = pl.cdiv(n, tile)
    n_pad = num_tiles * tile
    if n_pad != n:
        pad = n_pad - n
        x_p = jnp.pad(x2d, ((0, pad), (0, 0)))
        idx_p = jnp.pad(idx2d, ((0, pad), (0, 0)))
        gate_p = jnp.pad(gate2d, ((0, pad), (0, 0)))     # zero gates -> zero output rows
    else:
        x_p, idx_p, gate_p = x2d, idx2d, gate2d

    mix = make_expert_mix_kernel(hk, eh, ne_eh)
    out = pl.pallas_call(
        mix,
        out_shape=jax.ShapeDtypeStruct((n_pad, dout), jnp.float32),
        grid=(num_tiles,),
        in_specs=[
            pl.BlockSpec((tile, din), lambda i: (i, 0)),
            pl.BlockSpec((tile, hk), lambda i: (i, 0)),
            pl.BlockSpec((tile, hk), lambda i: (i, 0)),
            pl.BlockSpec((din, ne_eh), lambda i: (0, 0)),    # resident table
            pl.BlockSpec((ne_eh, dout), lambda i: (0, 0)),   # resident table
        ],
        out_specs=pl.BlockSpec((tile, dout), lambda i: (i, 0)),
        compiler_params=pltpu.CompilerParams(
            dimension_semantics=("parallel",),
            vmem_limit_bytes=32 * 1024 * 1024),
    )(x_p, idx_p, gate_p, down_t, up_flat)

    return out[:n].reshape(b, s, dout)


# --------------------------- pure-JAX reference ----------------------------- #
def peer_forward_reference(hidden_states, params):
    b, s, din = hidden_states.shape
    h, q_dim, k_top = NUM_HEADS, QUERY_DIM, NUM_EXPERTS_PER_TOK
    eh, dout = EXPERT_HIDDEN, OUTPUT_DIM
    ndims = len(PRODUCT_KEY_DIM)
    chunk = q_dim // ndims

    q = hidden_states @ params["wq"] + params["bq"]                          # [B,S,H*Q]
    q = q.reshape(b, s, h, q_dim)
    if BATCH_NORM_QUERY:
        qf = q.reshape(-1, q_dim)
        mean = jnp.mean(qf, axis=0)
        var = jnp.mean(jnp.square(qf - mean), axis=0)
        qf = (qf - mean) / jnp.sqrt(var + BN_EPS)
        q = qf.reshape(b, s, h, q_dim)

    total = None
    for i, _d in enumerate(PRODUCT_KEY_DIM):
        qc = q[..., i * chunk:(i + 1) * chunk]
        k = params["sub_keys"][i]
        if NORM_KEYS:
            k = k / jnp.maximum(
                jnp.linalg.norm(k, axis=-1, keepdims=True), L2_EPS)
        if NORM_QUERY:
            qc = qc / jnp.maximum(
                jnp.linalg.norm(qc, axis=-1, keepdims=True), L2_EPS)
        s_i = jnp.matmul(qc, k.T, precision=HIGHEST)
        total = s_i if total is None else (
            (total[..., :, None] + s_i[..., None, :]).reshape(*total.shape[:-1], -1))

    top_scores, top_idx = jax.lax.top_k(total, k_top)
    gate = jax.nn.softmax(top_scores, axis=-1)

    dw = params["expert_down"][top_idx].reshape(b, s, h, k_top, eh, din)
    uw = params["expert_up"][top_idx].reshape(b, s, h, k_top, dout, eh)

    ei = jnp.einsum("bshked,bsd->bshke", dw, hidden_states)
    act = 0.5 * ei * (1.0 + jax.lax.erf(ei * INV_SQRT2))
    eo = jnp.einsum("bshkoe,bshke->bshko", uw, act)
    out = (eo * gate[..., None]).sum(axis=3).sum(axis=2)
    return out


# --------------------------------- main ------------------------------------ #
def init_params(key):
    ndims = len(PRODUCT_KEY_DIM)
    chunk = QUERY_DIM // ndims
    keys = jax.random.split(key, 3 + ndims)
    params = {
        "wq": 0.02 * jax.random.normal(
            keys[0], (INPUT_DIM, NUM_HEADS * QUERY_DIM), jnp.float32),
        "bq": jnp.zeros((NUM_HEADS * QUERY_DIM,), jnp.float32),
        "sub_keys": [
            0.02 * jax.random.normal(keys[3 + i], (d, chunk), jnp.float32)
            for i, d in enumerate(PRODUCT_KEY_DIM)
        ],
        "expert_down": 0.02 * jax.random.normal(
            keys[1], (NUM_EXPERTS, INPUT_DIM * EXPERT_HIDDEN), jnp.float32),
        "expert_up": 0.02 * jax.random.normal(
            keys[2], (NUM_EXPERTS, OUTPUT_DIM * EXPERT_HIDDEN), jnp.float32),
    }
    return params


if __name__ == "__main__":
    root = jax.random.PRNGKey(0)
    k_x, k_p = jax.random.split(root)

    batch, seq = 2, 8
    x = jax.random.normal(k_x, (batch, seq, INPUT_DIM), jnp.float32)
    params = init_params(k_p)

    out = jax.block_until_ready(peer_forward_pallas(x, params))
    ref = jax.block_until_ready(peer_forward_reference(x, params))

    assert out.shape == (batch, seq, OUTPUT_DIM), out.shape
    assert bool(jnp.all(jnp.isfinite(out)))
    np.testing.assert_allclose(np.asarray(out), np.asarray(ref),
                               rtol=1e-2, atol=1e-2)

    print("KERNEL_OK")
</pallas_src>

<mosaic_0001>
module attributes {stable_mosaic.version = 11 : i64} {
  func.func @kernel(%arg0: memref<16x32xf32, #tpu.memory_space<vmem>>, %arg1: memref<32x32xf32, #tpu.memory_space<vmem>>, %arg2: memref<1x32xf32, #tpu.memory_space<vmem>>, %arg3: memref<32x32xf32, #tpu.memory_space<vmem>>, %arg4: memref<32x32xf32, #tpu.memory_space<vmem>>, %arg5: memref<32x4xf32, #tpu.memory_space<vmem>>, %arg6: memref<4x32xf32, #tpu.memory_space<vmem>>, %arg7: memref<32x128xf32, #tpu.memory_space<vmem>>, %arg8: memref<16x128xf32, #tpu.memory_space<vmem>>) attributes {dimension_semantics = [], scalar_prefetch = 0 : i64, scratch_operands = 0 : i64, tpu.core_type = #tpu.core_type<tc>} {
    %c0 = arith.constant 0 : index
    %c0_0 = arith.constant 0 : index
    %0 = vector.load %arg0[%c0, %c0_0] : memref<16x32xf32, #tpu.memory_space<vmem>>, vector<16x32xf32>
    %c0_1 = arith.constant 0 : index
    %c0_2 = arith.constant 0 : index
    %1 = vector.load %arg1[%c0_1, %c0_2] : memref<32x32xf32, #tpu.memory_space<vmem>>, vector<32x32xf32>
    %cst = arith.constant dense<0.000000e+00> : vector<16x32xf32>
    %2 = tpu.matmul %0, %1, %cst {dimension_numbers = #tpu.dot_dimension_numbers<[1], [0], [0], [1], [0, 0, 1, 1], [], []>} : vector<16x32xf32>, vector<32x32xf32>, vector<16x32xf32> -> vector<16x32xf32>
    %c0_3 = arith.constant 0 : index
    %c0_4 = arith.constant 0 : index
    %3 = vector.load %arg2[%c0_3, %c0_4] : memref<1x32xf32, #tpu.memory_space<vmem>>, vector<1x32xf32>
    %4 = vector.broadcast %3 : vector<1x32xf32> to vector<16x32xf32>
    %5 = arith.addf %2, %4 : vector<16x32xf32>
    %cst_5 = arith.constant dense<0.000000e+00> : vector<32xf32>
    %6 = vector.multi_reduction <add>, %5, %cst_5 [0] : vector<16x32xf32> to vector<32xf32>
    %7 = vector.shape_cast %6 : vector<32xf32> to vector<1x32xf32>
    %cst_6 = arith.constant 1.600000e+01 : f32
    %8 = vector.broadcast %cst_6 : f32 to vector<1x32xf32>
    %9 = arith.divf %7, %8 : vector<1x32xf32>
    %c0_7 = arith.constant 0 : index
    %c0_8 = arith.constant 0 : index
    %10 = vector.load %arg4[%c0_7, %c0_8] : memref<32x32xf32, #tpu.memory_space<vmem>>, vector<32x32xf32>
    %cst_9 = arith.constant dense<0.000000e+00> : vector<1x32xf32>
    %11 = tpu.matmul %9, %10, %cst_9 {dimension_numbers = #tpu.dot_dimension_numbers<[1], [0], [0], [1], [0, 0, 1, 1], [], []>, precision = #tpu.contract_precision<fp32>} : vector<1x32xf32>, vector<32x32xf32>, vector<1x32xf32> -> vector<1x32xf32>
    %12 = vector.broadcast %11 : vector<1x32xf32> to vector<16x32xf32>
    %13 = arith.subf %5, %12 : vector<16x32xf32>
    %14 = arith.mulf %13, %13 : vector<16x32xf32>
    %cst_10 = arith.constant dense<0.000000e+00> : vector<32xf32>
    %15 = vector.multi_reduction <add>, %14, %cst_10 [0] : vector<16x32xf32> to vector<32xf32>
    %16 = vector.shape_cast %15 : vector<32xf32> to vector<1x32xf32>
    %cst_11 = arith.constant 1.600000e+01 : f32
    %17 = vector.broadcast %cst_11 : f32 to vector<1x32xf32>
    %18 = arith.divf %16, %17 : vector<1x32xf32>
    %c0_12 = arith.constant 0 : index
    %c0_13 = arith.constant 0 : index
    %19 = vector.load %arg4[%c0_12, %c0_13] : memref<32x32xf32, #tpu.memory_space<vmem>>, vector<32x32xf32>
    %cst_14 = arith.constant dense<0.000000e+00> : vector<1x32xf32>
    %20 = tpu.matmul %18, %19, %cst_14 {dimension_numbers = #tpu.dot_dimension_numbers<[1], [0], [0], [1], [0, 0, 1, 1], [], []>, precision = #tpu.contract_precision<fp32>} : vector<1x32xf32>, vector<32x32xf32>, vector<1x32xf32> -> vector<1x32xf32>
    %cst_15 = arith.constant 9.99999974E-6 : f32
    %21 = vector.broadcast %cst_15 : f32 to vector<1x32xf32>
    %22 = arith.addf %20, %21 : vector<1x32xf32>
    %23 = math.rsqrt %22 : vector<1x32xf32>
    %24 = vector.broadcast %23 : vector<1x32xf32> to vector<16x32xf32>
    %25 = arith.mulf %13, %24 : vector<16x32xf32>
    %c0_16 = arith.constant 0 : index
    %c0_17 = arith.constant 0 : index
    %26 = vector.load %arg3[%c0_16, %c0_17] : memref<32x32xf32, #tpu.memory_space<vmem>>, vector<32x32xf32>
    %cst_18 = arith.constant dense<0.000000e+00> : vector<16x32xf32>
    %27 = tpu.matmul %25, %26, %cst_18 {dimension_numbers = #tpu.dot_dimension_numbers<[1], [0], [0], [1], [0, 0, 1, 1], [], []>, precision = #tpu.contract_precision<fp32>} : vector<16x32xf32>, vector<32x32xf32>, vector<16x32xf32> -> vector<16x32xf32>
    %28 = arith.mulf %25, %25 : vector<16x32xf32>
    %c0_19 = arith.constant 0 : index
    %c0_20 = arith.constant 0 : index
    %29 = vector.load %arg5[%c0_19, %c0_20] : memref<32x4xf32, #tpu.memory_space<vmem>>, vector<32x4xf32>
    %cst_21 = arith.constant dense<0.000000e+00> : vector<16x4xf32>
    %30 = tpu.matmul %28, %29, %cst_21 {dimension_numbers = #tpu.dot_dimension_numbers<[1], [0], [0], [1], [0, 0, 1, 1], [], []>, precision = #tpu.contract_precision<fp32>} : vector<16x32xf32>, vector<32x4xf32>, vector<16x4xf32> -> vector<16x4xf32>
    %31 = math.sqrt %30 : vector<16x4xf32>
    %cst_22 = arith.constant 9.99999996E-13 : f32
    %32 = vector.broadcast %cst_22 : f32 to vector<16x4xf32>
    %33 = arith.maximumf %31, %32 : vector<16x4xf32>
    %cst_23 = arith.constant 1.000000e+00 : f32
    %34 = vector.broadcast %cst_23 : f32 to vector<16x4xf32>
    %35 = arith.divf %34, %33 : vector<16x4xf32>
    %c0_24 = arith.constant 0 : index
    %c0_25 = arith.constant 0 : index
    %36 = vector.load %arg6[%c0_24, %c0_25] : memref<4x32xf32, #tpu.memory_space<vmem>>, vector<4x32xf32>
    %cst_26 = arith.constant dense<0.000000e+00> : vector<16x32xf32>
    %37 = tpu.matmul %35, %36, %cst_26 {dimension_numbers = #tpu.dot_dimension_numbers<[1], [0], [0], [1], [0, 0, 1, 1], [], []>, precision = #tpu.contract_precision<fp32>} : vector<16x4xf32>, vector<4x32xf32>, vector<16x32xf32> -> vector<16x32xf32>
    %38 = arith.mulf %27, %37 : vector<16x32xf32>
    %c0_27 = arith.constant 0 : index
    %c0_28 = arith.constant 0 : index
    %39 = vector.load %arg7[%c0_27, %c0_28] : memref<32x128xf32, #tpu.memory_space<vmem>>, vector<32x128xf32>
    %cst_29 = arith.constant dense<0.000000e+00> : vector<16x128xf32>
    %40 = tpu.matmul %38, %39, %cst_29 {dimension_numbers = #tpu.dot_dimension_numbers<[1], [0], [0], [1], [0, 0, 1, 1], [], []>, precision = #tpu.contract_precision<fp32>} : vector<16x32xf32>, vector<32x128xf32>, vector<16x128xf32> -> vector<16x128xf32>
    %c0_30 = arith.constant 0 : index
    %c0_31 = arith.constant 0 : index
    %41 = vector.load %arg8[%c0_30, %c0_31] : memref<16x128xf32, #tpu.memory_space<vmem>>, vector<16x128xf32>
    tpu.vector_store %arg8[%c0_30, %c0_31], %40 {strides = array<i32>} : memref<16x128xf32, #tpu.memory_space<vmem>>, vector<16x128xf32>,
    return
  }
}

</mosaic_0001>

<bundles_post_ra>
// kernel: tpu_custom_call.1
= control target key start
LH: loop header
LB: loop body
LE: loop exit
PB: predicated region body
PF: predicated region fallthrough
CT: control target
= control target key end

     0   :  { %13 = vsyncpa [#allocation3], 0  ;;  %s4744_s0 = inlined_call_operand.hbm [shape: f32[16,32], index: 0, kind: input, shape index: {}]   ;;  %s4745_s1 = inlined_call_operand.vmem [shape: f32[32,32], index: 1, kind: input, shape index: {}]   ;;  %s4746_s2 = inlined_call_operand.vmem [shape: f32[1,32], index: 2, kind: input, shape index: {}]   ;;  %s4747_s3 = inlined_call_operand.hbm [shape: f32[32,32], index: 3, kind: input, shape index: {}]   ;;  %s4748_s4 = inlined_call_operand.hbm [shape: f32[32,32], index: 4, kind: input, shape index: {}]   ;;  %s4749_s5 = inlined_call_operand.vmem [shape: f32[32,4], index: 5, kind: input, shape index: {}]   ;;  %s4750_s6 = inlined_call_operand.vmem [shape: f32[4,32], index: 6, kind: input, shape index: {}]   ;;  %s4751_s7 = inlined_call_operand.hbm [shape: f32[32,128], index: 7, kind: input, shape index: {}]   ;;  %s4752_s8 = inlined_call_operand.hbm [shape: f32[16,128], index: 8, kind: output, shape index: {}]  }
   0x1   :  { %14 = vsyncpa [#allocation6], 0 }
   0x2   :  { %15 = vsyncpa [#allocation9], 0 }
   0x3   :  { %16 = vsyncpa [#allocation4], 0  ;;  %s4344_s27 = smov [#allocation5]   ;;  %s4345_s29 = smov [#allocation2]  }
   0x4   :  { %s38_s28 = sshll.u32 %s4344_s27, 4  ;;  %s22_s30 = sshll.u32 %s4345_s29, 4  ;;  %s39_s28 = int_to_ptr.vmem [resolvable:$true] %s38_s28  ;;  %s4399_s30 = int_to_ptr.vmem [resolvable:$true] %s22_s30 }
   0x5   :  { %s4226_s11 = scalar_lea.hbm %s4747_s3, 512 }
   0x6   :  { %p4227_p0 = scmp.ne.s32.totalorder %s4747_s3, %s4226_s11  ;;  %p4230_p1 = scmp.lt.u32.totalorder %s4226_s11, %s4747_s3 }
   0x8   :  { %p4232_p2 = pnand %p4230_p1, %p4227_p0 }
   0xa   :  { %4235 = shalt.err (!%p4232_p2)
}
   0xb   :  { %s4236_s16 = scalar_lea.vmem %s39_s28, 512  ;;  %p4241_p4 = scmp.lt.s32.totalorder %s39_s28, %s39_s28 }
   0xc   :  { %p4237_p3 = scmp.ne.s32.totalorder %s39_s28, %s4236_s16  ;;  %p4242_p5 = scmp.lt.s32.totalorder %s4236_s16, %s4236_s16 }
   0xe   :  { %p4243_p6 = por %p4242_p5, %p4241_p4 }
  0x10   :  { %p4244_p7 = pnand %p4243_p6, %p4237_p3 }
  0x12   :  { %4247 = shalt.err (!%p4244_p7)
}
  0x13   :  { %s4346_s17 = smov 128   ;;  %s4347_s18 = smov 8  }
  0x14   :  { %44 = dma.hbm_to_vmem [thread:$0]  %s4747_s3, 512, %s39_s28, [#allocation6], %s4346_s17, %s4346_s17, %s4347_s18  }
  0x15   :  { %s4248_s23 = scalar_lea.hbm %s4744_s0, 256 }
  0x16   :  { %p4249_p8 = scmp.ne.s32.totalorder %s4744_s0, %s4248_s23  ;;  %p4252_p9 = scmp.lt.u32.totalorder %s4248_s23, %s4744_s0 }
  0x18   :  { %p4254_p10 = pnand %p4252_p9, %p4249_p8 }
  0x1a   :  { %4257 = shalt.err (!%p4254_p10)
}
  0x1b   :  { %s4258_s29 = scalar_lea.vmem %s4399_s30, 256  ;;  %p4263_p12 = scmp.lt.s32.totalorder %s4399_s30, %s4399_s30 }
  0x1c   :  { %p4259_p11 = scmp.ne.s32.totalorder %s4399_s30, %s4258_s29  ;;  %p4264_p13 = scmp.lt.s32.totalorder %s4258_s29, %s4258_s29 }
  0x1e   :  { %p4265_p0 = por %p4264_p13, %p4263_p12 }
  0x20   :  { %p4266_p1 = pnand %p4265_p0, %p4259_p11 }
  0x22   :  { %4269 = shalt.err (!%p4266_p1)
}
  0x23   :  { %28 = dma.hbm_to_vmem [thread:$0]  %s4744_s0, 256, %s4399_s30, [#allocation3], %s4346_s17, %s4346_s17, %s4347_s18  }
  0x24   :  { %s4348_s9 = smov [#allocation7]   ;;  %s4349_s11 = smov [#allocation8]  }
  0x25   :  { %s50_s10 = sshll.u32 %s4348_s9, 4  ;;  %s66_s12 = sshll.u32 %s4349_s11, 4  ;;  %s51_s10 = int_to_ptr.vmem [resolvable:$true] %s50_s10  ;;  %s4436_s12 = int_to_ptr.vmem [resolvable:$true] %s66_s12 }
  0x26   :  { %s4270_s15 = scalar_lea.hbm %s4748_s4, 512 }
  0x27   :  { %p4271_p2 = scmp.ne.s32.totalorder %s4748_s4, %s4270_s15  ;;  %p4274_p3 = scmp.lt.u32.totalorder %s4270_s15, %s4748_s4 }
  0x29   :  { %p4276_p4 = pnand %p4274_p3, %p4271_p2 }
  0x2b   :  { %4279 = shalt.err (!%p4276_p4)
}
  0x2c   :  { %s4280_s0 = scalar_lea.vmem %s51_s10, 512  ;;  %p4285_p6 = scmp.lt.s32.totalorder %s51_s10, %s51_s10 }
  0x2d   :  { %p4281_p5 = scmp.ne.s32.totalorder %s51_s10, %s4280_s0  ;;  %p4286_p7 = scmp.lt.s32.totalorder %s4280_s0, %s4280_s0 }
  0x2f   :  { %p4287_p8 = por %p4286_p7, %p4285_p6 }
  0x31   :  { %p4288_p9 = pnand %p4287_p8, %p4281_p5 }
  0x33   :  { %4291 = shalt.err (!%p4288_p9)
}
  0x34   :  { %56 = dma.hbm_to_vmem [thread:$0]  %s4748_s4, 512, %s51_s10, [#allocation6], %s4346_s17, %s4346_s17, %s4347_s18  }
  0x35   :  { %s4292_s25 = scalar_lea.hbm %s4751_s7, 512 }
  0x36   :  { %p4293_p10 = scmp.ne.s32.totalorder %s4751_s7, %s4292_s25  ;;  %p4296_p11 = scmp.lt.u32.totalorder %s4292_s25, %s4751_s7 }
  0x38   :  { %p4298_p12 = pnand %p4296_p11, %p4293_p10 }
  0x3a   :  { %4301 = shalt.err (!%p4298_p12)
}
  0x3b   :  { %s4302_s28 = scalar_lea.vmem %s4436_s12, 512  ;;  %p4307_p0 = scmp.lt.s32.totalorder %s4436_s12, %s4436_s12 }
  0x3c   :  { %p4303_p13 = scmp.ne.s32.totalorder %s4436_s12, %s4302_s28  ;;  %p4308_p1 = scmp.lt.s32.totalorder %s4302_s28, %s4302_s28 }
  0x3e   :  { %p4309_p2 = por %p4308_p1, %p4307_p0 }
  0x40   :  { %p4310_p3 = pnand %p4309_p2, %p4303_p13 }
  0x42   :  { %4313 = shalt.err (!%p4310_p3)
}
  0x43   :  { %72 = dma.hbm_to_vmem [thread:$0]  %s4751_s7, 512, %s4436_s12, [#allocation9], %s4346_s17, %s4346_s17, %s4347_s18  }
  0x44   :  { %4336 = dma.done.wait [#allocation3], 256  }
  0x45   :  { %4337 = vsyncadd [#allocation3], 4294967040 }
  0x46   :  { %4338 = dma.done.wait [#allocation6], 1024  }
  0x47   :  { %4339 = vsyncadd [#allocation6], 4294966272 }
  0x48   :  { %4340 = dma.done.wait [#allocation9], 512  }
  0x49   :  { %4341 = vsyncadd [#allocation9], 4294966784  ;;  %vm98_vm0 = vcmask 261120   ;;  %v87_v0 = vld [vmem:[%s4745_s1] sm:$0xff]  ;;  %v88_v1 = vld [vmem:[%s4745_s1 + $0x8] sm:$0xff]  ;;  %v4350_v14 = vmov 0.0|0.0   ;;  %v683_v63 = vlaneseq }
  0x4a   :  { %v89_v2 = vld [vmem:[%s4745_s1 + $0x10] sm:$0xff]  ;;  %v3922_v3 = vpack.c.bf16 %v88_v1, %v87_v0  ;;  %v90_v4 = vld [vmem:[%s4745_s1 + $0x18] sm:$0xff]  ;;  %v85_v5 = vld [vmem:[#allocation2] sm:$0xff]  ;;  %vm4351_vm1 = vmmov 0   ;;  %v4352_v18 = vmov 0.0   ;;  %3972 = vmatprep.subr.bf16.mxu0 %v4350_v14  ;;  %vm2302_vm2 = vcmask 1043456  }
  0x4b   :  { %v3926_v6 = vpack.c.bf16 %v90_v4, %v89_v2  ;;  %3559 = vmatprep.mubr.msk.f32.mxu1 %vm98_vm0, %v85_v5  ;;  %v86_v7 = vld [vmem:[#allocation2 + $0x8] sm:$0xff]  ;;  %v191_v8 = vld [vmem:[#allocation7] sm:$0xff]  ;;  %v192_v9 = vld [vmem:[#allocation7 + $0x8] sm:$0xff]  ;;  %3647 = vmatprep.mubr.msk.f32.mxu0 %vm4351_vm1, %v4352_v18  ;;  %v4550_v0 = vshrl.u32 %v683_v63, 7  ;;  %vm2295_vm7 = vcmask 31744  }
  0x4c   :  { %3923 = vmatprep.subr.bf16.mxu1 %v3922_v3  ;;  %v199_v10 = vand.u32 4294901760, %v191_v8  ;;  %v202_v11 = vand.u32 4294901760, %v192_v9  ;;  %v193_v12 = vld [vmem:[#allocation7 + $0x10] sm:$0xff]  ;;  %v194_v13 = vld [vmem:[#allocation7 + $0x18] sm:$0xff] }
  0x4d   :  { %3925 = vmatpush3.bf16.msra.mxu1 %v3922_v3  ;;  %v205_v16 = vand.u32 4294901760, %v193_v12  ;;  %v208_v17 = vand.u32 4294901760, %v194_v13  ;;  %v3356_v42 = vld [vmem:[%s4746_s2] ss:$0 sm:$0xff]  ;;  %v685_v1 = vsub.s32 0, %v4550_v0 }
  0x4e   :  { %3927 = vmatprep.subr.bf16.mxu1 %v3926_v6  ;;  %v4488_v15 = vpack.c.bf16 %v202_v11, %v199_v10  ;;  %v279_v19 = vsub.f32 %v191_v8, %v199_v10  ;;  %v286_v20 = vsub.f32 %v192_v9, %v202_v11 }
  0x4f   :  { %v4496_v21 = vpack.c.bf16 %v208_v17, %v205_v16  ;;  %v293_v25 = vsub.f32 %v193_v12, %v205_v16  ;;  %v300_v26 = vsub.f32 %v194_v13, %v208_v17 }
  0x50   :  { %v280_v22 = vand.u32 4294901760, %v279_v19  ;;  %v287_v23 = vand.u32 4294901760, %v286_v20  ;;  %v4502_v38 = vpack.c.bf16 %v286_v20, %v279_v19 }
  0x51   :  { %3929 = vmatpush3.bf16.msra.mxu1 %v3926_v6  ;;  %v294_v29 = vand.u32 4294901760, %v293_v25  ;;  %v301_v30 = vand.u32 4294901760, %v300_v26  ;;  %v4505_v39 = vpack.c.bf16 %v300_v26, %v293_v25 }
  0x52   :  { %3930 = vmatprep.subr.bf16.mxu1 %v4350_v14  ;;  %v281_v24 = vsub.f32 %v279_v19, %v280_v22  ;;  %v288_v27 = vsub.f32 %v286_v20, %v287_v23  ;;  %v4507_v40 = vpack.c.bf16 %v287_v23, %v280_v22 }
  0x53   :  { %v295_v32 = vsub.f32 %v293_v25, %v294_v29  ;;  %v302_v33 = vsub.f32 %v300_v26, %v301_v30  ;;  %v4509_v41 = vpack.c.bf16 %v301_v30, %v294_v29  ;;  %v1196_v29 = vld [vmem:[#allocation5] sm:$0xff]  ;;  %v1197_v30 = vld [vmem:[#allocation5 + $0x8] sm:$0xff] }
  0x54   :  { %3560 = vmatmul.mubr.msk.f32.vlgmr.msra.gmra.mrb[0].mxu1 %vm98_vm0, %v86_v7  ;;  %v282_v28 = vand.u32 4294901760, %v281_v24  ;;  %v289_v31 = vand.u32 4294901760, %v288_v27 }
  0x55   :  { %3570 = vmatprep.mubr.msk.f32.mxu1 %vm4351_vm1, %v4352_v18  ;;  %3932 = vmatpush3.bf16.msra.mxu1 %v4488_v15  ;;  %v296_v35 = vand.u32 4294901760, %v295_v32  ;;  %v303_v36 = vand.u32 4294901760, %v302_v33  ;;  %v1207_v32 = vand.u32 4294901760, %v1196_v29  ;;  %v1210_v33 = vand.u32 4294901760, %v1197_v30 }
  0x56   :  { %3933 = vmatprep.subr.bf16.mxu1 %v4350_v14  ;;  %v3937_v34 = vpack.c.bf16 %v289_v31, %v282_v28  ;;  %v1736_v31 = vld [vmem:[%s4749_s5] sm:$0xff] }
  0x57   :  { %v3940_v37 = vpack.c.bf16 %v303_v36, %v296_v35  ;;  %v1198_v35 = vld [vmem:[#allocation5 + $0x10] sm:$0xff] }
  0x58   :  { %3974 = vmatpush3.bf16.msra.mxu0 %v3937_v34 }
  0x59   :  { %3935 = vmatpush3.bf16.msra.mxu1 %v4496_v21  ;;  %3975 = vmatprep.subr.bf16.mxu0 %v4350_v14 }
  0x5a   :  { %3936 = vmatprep.subr.bf16.mxu1 %v4350_v14 }
  0x5c   :  { %3977 = vmatpush3.bf16.msra.mxu0 %v3940_v37 }
  0x5d   :  { %3978 = vmatprep.subr.bf16.mxu0 %v4350_v14 }
 0x127   :  { %v3561_v43 = vpop.f32.mrb[0].mxu1 }
 0x128   :  { %v177_v44 = vadd.f32 %v3561_v43, %v3356_v42  ;;  %v171_v45 = vpop.f32.mrb[1].mxu1 }
 0x129   :  { %v172_v46 = vadd.f32 %v3356_v42, %v171_v45  ;;  %v1304_v45 = vsub.f32 %v1197_v30, %v1210_v33 }
 0x12a   :  { %v181_v47 = vsel %vm98_vm0, %v177_v44, 0.0 }
 0x12b   :  { %v180_v48 = vsel %vm98_vm0, %v172_v46, 0.0 }
 0x12c   :  { %v182_v49 = vadd.f32 %v181_v47, %v180_v48  ;;  %v1305_v48 = vand.u32 4294901760, %v1304_v45 }
 0x12e   :  { %v183_v50 = vrot.slane %v182_v49, 4 }
 0x130   :  { %v184_v51 = vadd.f32 %v183_v50, %v182_v49 }
 0x132   :  { %v185_v52 = vrot.slane %v184_v51, 2 }
 0x134   :  { %v186_v53 = vadd.f32 %v185_v52, %v184_v51  ;;  %v1306_v52 = vsub.f32 %v1304_v45, %v1305_v48 }
 0x136   :  { %v187_v54 = vrot.slane %v186_v53, 1 }
 0x138   :  { %v188_v55 = vadd.f32 %v187_v54, %v186_v53 }
 0x13a   :  { %v190_v56 = vmul.f32 0.0625, %v188_v55 }
 0x13c   :  { %v196_v57 = vsel %vm98_vm0, %v190_v56, 0 }
 0x13d   :  { %v267_v58 = vand.u32 4294901760, %v196_v57 }
 0x13f   :  { %v268_v59 = vsub.f32 %v196_v57, %v267_v58 }
 0x141   :  { %v269_v60 = vand.u32 4294901760, %v268_v59 }
 0x143   :  { %v270_v61 = vsub.f32 %v268_v59, %v269_v60 }
 0x145   :  { %v271_v62 = vand.u32 4294901760, %v270_v61 }
 0x147   :  { %3571 = vmatmul.mubr.f32.vlgmr.msra.gmra.mrb[2].mxu1 %v271_v62 }
 0x148   :  { %3938 = vmatpush3.bf16.msra.mxu1 %v3937_v34  ;;  %3581 = vmatprep.mubr.msk.f32.mxu1 %vm4351_vm1, %v4352_v18  ;;  %v1747_v34 = vand.u32 4294901760, %v1736_v31 }
 0x149   :  { %3939 = vmatprep.subr.bf16.mxu1 %v4350_v14 }
 0x14a   :  { %v1837_v49 = vsub.f32 %v1736_v31, %v1747_v34 }
 0x14c   :  { %3941 = vmatpush3.bf16.msra.mxu1 %v3940_v37  ;;  %v1838_v53 = vand.u32 4294901760, %v1837_v49 }
 0x14d   :  { %3942 = vmatprep.subr.bf16.mxu1 %v4350_v14 }
 0x14f   :  { %3582 = vmatmul.mubr.f32.vlgmr.msra.gmra.mrb[2].mxu1 %v267_v58 }
 0x150   :  { %3944 = vmatpush3.bf16.msra.mxu1 %v4502_v38  ;;  %3592 = vmatprep.mubr.msk.f32.mxu1 %vm4351_vm1, %v4352_v18 }
 0x151   :  { %3945 = vmatprep.subr.bf16.mxu1 %v4350_v14 }
 0x154   :  { %3947 = vmatpush3.bf16.msra.mxu1 %v4505_v39 }
 0x155   :  { %3948 = vmatprep.subr.bf16.mxu1 %v4350_v14 }
 0x157   :  { %3593 = vmatmul.mubr.f32.vlgmr.msra.gmra.mrb[2].mxu1 %v268_v59  ;;  %v1839_v59 = vsub.f32 %v1837_v49, %v1838_v53 }
 0x158   :  { %3950 = vmatpush3.bf16.msra.mxu1 %v4488_v15  ;;  %3603 = vmatprep.mubr.msk.f32.mxu1 %vm4351_vm1, %v4352_v18 }
 0x159   :  { %3951 = vmatprep.subr.bf16.mxu1 %v4350_v14 }
 0x15c   :  { %3953 = vmatpush3.bf16.msra.mxu1 %v4496_v21 }
 0x15d   :  { %3954 = vmatprep.subr.bf16.mxu1 %v4350_v14 }
 0x15f   :  { %3604 = vmatmul.mubr.f32.vlgmr.msra.gmra.mrb[2].mxu1 %v269_v60 }
 0x160   :  { %3956 = vmatpush3.bf16.msra.mxu1 %v4507_v40  ;;  %3614 = vmatprep.mubr.msk.f32.mxu1 %vm4351_vm1, %v4352_v18 }
 0x161   :  { %3957 = vmatprep.subr.bf16.mxu1 %v4350_v14 }
 0x164   :  { %3959 = vmatpush3.bf16.msra.mxu1 %v4509_v41 }
 0x165   :  { %3960 = vmatprep.subr.bf16.mxu1 %v4350_v14 }
 0x167   :  { %3615 = vmatmul.mubr.f32.vlgmr.msra.gmra.mrb[2].mxu1 %v267_v58 }
 0x168   :  { %3962 = vmatpush3.bf16.msra.mxu1 %v4488_v15  ;;  %3625 = vmatprep.mubr.msk.f32.mxu1 %vm4351_vm1, %v4352_v18 }
 0x169   :  { %3963 = vmatprep.subr.bf16.mxu1 %v4350_v14 }
 0x16c   :  { %3965 = vmatpush3.bf16.msra.mxu1 %v4496_v21 }
 0x16d   :  { %3966 = vmatprep.subr.bf16.mxu1 %v4350_v14 }
 0x16f   :  { %3626 = vmatmul.mubr.f32.vlgmr.msra.gmra.mrb[2].mxu1 %v267_v58  ;;  %v1307_v58 = vand.u32 4294901760, %v1306_v52 }
 0x170   :  { %3968 = vmatpush3.bf16.msra.mxu1 %v4488_v15  ;;  %3636 = vmatprep.mubr.msk.f32.mxu1 %vm4351_vm1, %v4352_v18 }
 0x171   :  { %3969 = vmatprep.subr.bf16.mxu1 %v4350_v14 }
 0x174   :  { %3971 = vmatpush3.bf16.msra.mxu1 %v4496_v21 }
 0x242   :  { %v679_v2 = vpop.f32.mrb[2].mxu1 }
 0x243   :  { %v686_v3 = vrot.slane %v679_v2, %v685_v1  ;;  %v3627_v4 = vpop.f32.mrb[3].mxu1 }
 0x244   :  { %v1840_v4 = vand.u32 4294901760, %v1839_v59 }
 0x245   :  { %v4555_v5 = vsub.f32 %v172_v46, %v686_v3  ;;  %v4557_v6 = vsub.f32 %v177_v44, %v686_v3  ;;  %v1297_v44 = vsub.f32 %v1196_v29, %v1207_v32 }
 0x247   :  { %v689_v7 = vmul.f32 %v4555_v5, %v4555_v5  ;;  %v690_v8 = vmul.f32 %v4557_v6, %v4557_v6  ;;  %v1298_v47 = vand.u32 4294901760, %v1297_v44 }
 0x249   :  { %v691_v9 = vsel %vm98_vm0, %v689_v7, 0.0  ;;  %v692_v10 = vsel %vm98_vm0, %v690_v8, 0.0  ;;  %v1299_v51 = vsub.f32 %v1297_v44, %v1298_v47  ;;  %v4624_v29 = vpack.c.bf16 %v1305_v48, %v1298_v47 }
 0x24a   :  { %v693_v11 = vadd.f32 %v692_v10, %v691_v9 }
 0x24b   :  { %v1300_v57 = vand.u32 4294901760, %v1299_v51 }
 0x24c   :  { %v694_v12 = vrot.slane %v693_v11, 4 }
 0x24d   :  { %v4617_v63 = vpack.c.bf16 %v1307_v58, %v1300_v57 }
 0x24e   :  { %v695_v13 = vadd.f32 %v694_v12, %v693_v11 }
 0x250   :  { %v696_v16 = vrot.slane %v695_v13, 2 }
 0x252   :  { %v697_v17 = vadd.f32 %v696_v16, %v695_v13 }
 0x254   :  { %v698_v19 = vrot.slane %v697_v17, 1 }
 0x256   :  { %v699_v20 = vadd.f32 %v698_v19, %v697_v17 }
 0x258   :  { %v700_v22 = vmul.f32 0.0625, %v699_v20 }
 0x25a   :  { %v702_v23 = vsel %vm98_vm0, %v700_v22, 0 }
 0x25b   :  { %v773_v24 = vand.u32 4294901760, %v702_v23 }
 0x25d   :  { %v774_v25 = vsub.f32 %v702_v23, %v773_v24  ;;  %3648 = vmatmul.mubr.f32.vlgmr.msra.gmra.mrb[0].mxu0 %v773_v24 }
 0x25e   :  { %3980 = vmatpush3.bf16.msra.mxu0 %v4502_v38  ;;  %3658 = vmatprep.mubr.msk.f32.mxu0 %vm4351_vm1, %v4352_v18  ;;  %v1739_v38 = vld [vmem:[%s4749_s5 + $0x18] sm:$0xff] }
 0x25f   :  { %3981 = vmatprep.subr.bf16.mxu0 %v4350_v14  ;;  %v775_v26 = vand.u32 4294901760, %v774_v25 }
 0x261   :  { %v776_v27 = vsub.f32 %v774_v25, %v775_v26 }
 0x262   :  { %3983 = vmatpush3.bf16.msra.mxu0 %v4505_v39  ;;  %v4601_v39 = vpack.c.bf16 %v1210_v33, %v1207_v32 }
 0x263   :  { %3984 = vmatprep.subr.bf16.mxu0 %v4350_v14  ;;  %v777_v28 = vand.u32 4294901760, %v776_v27 }
 0x264   :  { %4003 = vmatprep.subr.bf16.mxu1 %v4601_v39 }
 0x265   :  { %3637 = vmatmul.mubr.f32.vlgmr.msra.gmra.mrb[4].mxu1 %v777_v28  ;;  %3659 = vmatmul.mubr.f32.vlgmr.msra.gmra.mrb[0].mxu0 %v774_v25  ;;  %v4018_v25 = vpack.c.bf16 %v1304_v45, %v1297_v44 }
 0x266   :  { %3986 = vmatpush3.bf16.msra.mxu0 %v4488_v15  ;;  %3669 = vmatprep.mubr.msk.f32.mxu0 %vm4351_vm1, %v4352_v18 }
 0x267   :  { %3987 = vmatprep.subr.bf16.mxu0 %v4350_v14  ;;  %4005 = vmatpush3.bf16.msra.mxu1 %v4601_v39 }
 0x26a   :  { %3989 = vmatpush3.bf16.msra.mxu0 %v4496_v21 }
 0x26b   :  { %3990 = vmatprep.subr.bf16.mxu0 %v4350_v14 }
 0x26d   :  { %3670 = vmatmul.mubr.f32.vlgmr.msra.gmra.mrb[0].mxu0 %v775_v26 }
 0x26e   :  { %3992 = vmatpush3.bf16.msra.mxu0 %v4507_v40  ;;  %3680 = vmatprep.mubr.msk.f32.mxu0 %vm4351_vm1, %v4352_v18 }
 0x26f   :  { %3993 = vmatprep.subr.bf16.mxu0 %v4350_v14 }
 0x272   :  { %3995 = vmatpush3.bf16.msra.mxu0 %v4509_v41  ;;  %v1756_v41 = vand.u32 4294901760, %v1739_v38 }
 0x273   :  { %3996 = vmatprep.subr.bf16.mxu0 %v4350_v14 }
 0x274   :  { %v1858_v3 = vsub.f32 %v1739_v38, %v1756_v41 }
 0x275   :  { %3681 = vmatmul.mubr.f32.vlgmr.msra.gmra.mrb[0].mxu0 %v773_v24 }
 0x276   :  { %3998 = vmatpush3.bf16.msra.mxu0 %v4488_v15  ;;  %3691 = vmatprep.mubr.msk.f32.mxu0 %vm4351_vm1, %v4352_v18  ;;  %v1737_v15 = vld [vmem:[%s4749_s5 + $0x8] sm:$0xff]  ;;  %v1859_v11 = vand.u32 4294901760, %v1858_v3 }
 0x277   :  { %3999 = vmatprep.subr.bf16.mxu0 %v4350_v14  ;;  %v1199_v18 = vld [vmem:[#allocation5 + $0x18] sm:$0xff]  ;;  %v1750_v36 = vand.u32 4294901760, %v1737_v15  ;;  %v1213_v14 = vand.u32 4294901760, %v1198_v35 }
 0x278   :  { %v1216_v37 = vand.u32 4294901760, %v1199_v18  ;;  %v1860_v19 = vsub.f32 %v1858_v3, %v1859_v11 }
 0x279   :  { %v4603_v42 = vpack.c.bf16 %v1750_v36, %v1747_v34  ;;  %v1844_v50 = vsub.f32 %v1737_v15, %v1750_v36  ;;  %v1311_v55 = vsub.f32 %v1198_v35, %v1213_v14 }
 0x27a   :  { %4001 = vmatpush3.bf16.msra.mxu0 %v4496_v21  ;;  %v1738_v21 = vld [vmem:[%s4749_s5 + $0x10] sm:$0xff]  ;;  %v4605_v43 = vpack.c.bf16 %v1216_v37, %v1213_v14  ;;  %v1318_v56 = vsub.f32 %v1199_v18, %v1216_v37  ;;  %v1861_v23 = vand.u32 4294901760, %v1860_v19 }
 0x27b   :  { %v1753_v40 = vand.u32 4294901760, %v1738_v21  ;;  %4051 = vmatprep.subr.bf16.mxu0 %v4603_v42  ;;  %v1845_v54 = vand.u32 4294901760, %v1844_v50  ;;  %v1312_v61 = vand.u32 4294901760, %v1311_v55  ;;  %v4066_v26 = vpack.c.bf16 %v1844_v50, %v1837_v49 }
 0x27c   :  { %4007 = vmatprep.subr.bf16.mxu1 %v4605_v43  ;;  %v1319_v62 = vand.u32 4294901760, %v1318_v56  ;;  %v4620_v27 = vpack.c.bf16 %v1318_v56, %v1311_v55 }
 0x27d   :  { %3692 = vmatmul.mubr.f32.vlgmr.msra.gmra.mrb[0].mxu0 %v773_v24  ;;  %v4608_v46 = vpack.c.bf16 %v1756_v41, %v1753_v40  ;;  %4009 = vmatpush3.bf16.msra.mxu1 %v4605_v43  ;;  %v1846_v60 = vsub.f32 %v1844_v50, %v1845_v54  ;;  %v1851_v2 = vsub.f32 %v1738_v21, %v1753_v40 }
 0x27e   :  { %4053 = vmatpush3.bf16.msra.mxu0 %v4603_v42  ;;  %v1313_v8 = vsub.f32 %v1311_v55, %v1312_v61  ;;  %v1320_v9 = vsub.f32 %v1318_v56, %v1319_v62  ;;  %4011 = vmatprep.subr.bf16.mxu1 %v4617_v63  ;;  %v4626_v30 = vpack.c.bf16 %v1845_v54, %v1838_v53 }
 0x27f   :  { %4055 = vmatprep.subr.bf16.mxu0 %v4608_v46  ;;  %v1847_v7 = vand.u32 4294901760, %v1846_v60  ;;  %v1852_v10 = vand.u32 4294901760, %v1851_v2  ;;  %v4622_v28 = vpack.c.bf16 %v1858_v3, %v1851_v2  ;;  %v4628_v31 = vpack.c.bf16 %v1319_v62, %v1312_v61 }
 0x280   :  { %v1314_v13 = vand.u32 4294901760, %v1313_v8  ;;  %v1321_v16 = vand.u32 4294901760, %v1320_v9 }
 0x281   :  { %v4058_v12 = vpack.c.bf16 %v1847_v7, %v1840_v4  ;;  %v1853_v17 = vsub.f32 %v1851_v2, %v1852_v10  ;;  %v4630_v32 = vpack.c.bf16 %v1859_v11, %v1852_v10 }
 0x282   :  { %4057 = vmatpush3.bf16.msra.mxu0 %v4608_v46  ;;  %v4014_v20 = vpack.c.bf16 %v1321_v16, %v1314_v13 }
 0x283   :  { %4059 = vmatprep.subr.bf16.mxu0 %v4058_v12  ;;  %v1854_v22 = vand.u32 4294901760, %v1853_v17 }
 0x285   :  { %v4062_v24 = vpack.c.bf16 %v1861_v23, %v1854_v22 }
 0x338   :  { %v779_v33 = vpop.f32.mrb[4].mxu1 }
 0x339   :  { %v3638_v15 = vpop.f32.mrb[5].mxu1  ;;  %v780_v34 = vadd.f32 1e-05, %v779_v33 }
 0x350   :  { %v1185_v35 = vpop.f32.mrb[0].mxu0 }
 0x351   :  { %v4147_v18 = vadd.f32 %v1185_v35, %v780_v34  ;;  %v3693_v36 = vpop.f32.mrb[1].mxu0 }
 0x353   :  { %4216 = vrsqrt.f32 %v4147_v18 }
 0x35d   :  { %v4217_v14 = vpop.eup %4216 }
 0x35e   :  { %v1193_v37 = vrot.slane %v4217_v14, %v685_v1 }
 0x360   :  { %v1195_v21 = vmul.f32 %v1193_v37, %v4557_v6  ;;  %v1194_v38 = vmul.f32 %v1193_v37, %v4555_v5 }
 0x362   :  { %v1201_v40 = vsel %vm98_vm0, %v1194_v38, 0  ;;  %v1204_v41 = vsel %vm98_vm0, %v1195_v21, 0  ;;  %v1734_v44 = vmul.f32 %v1194_v38, %v1194_v38  ;;  %v1735_v45 = vmul.f32 %v1195_v21, %v1195_v21  ;;  %v2797_v38 = vld [vmem:[#allocation8] sm:$0xff] }
 0x363   :  { %v4638_v47 = vand.u32 4294901760, %v1201_v40  ;;  %v4640_v48 = vand.u32 4294901760, %v1204_v41 }
 0x364   :  { %v1741_v49 = vsel %vm98_vm0, %v1734_v44, 0  ;;  %v1744_v50 = vsel %vm98_vm0, %v1735_v45, 0 }
 0x365   :  { %v1276_v0 = vsub.f32 %v1201_v40, %v4638_v47  ;;  %v1286_v1 = vsub.f32 %v1204_v41, %v4640_v48  ;;  %v4646_v6 = vand.u32 4294901760, %v1741_v49  ;;  %v4648_v5 = vand.u32 4294901760, %v1744_v50  ;;  %v2798_v40 = vld [vmem:[#allocation8 + $0x8] sm:$0xff] }
 0x366   :  { %v2808_v41 = vand.u32 4294901760, %v2797_v38  ;;  %v2811_v44 = vand.u32 4294901760, %v2798_v40 }
 0x367   :  { %v1277_v51 = vand.u32 4294901760, %v1276_v0  ;;  %v1287_v52 = vand.u32 4294901760, %v1286_v1  ;;  %v1816_v53 = vsub.f32 %v1741_v49, %v4646_v6  ;;  %v1826_v54 = vsub.f32 %v1744_v50, %v4648_v5  ;;  %v2799_v49 = vld [vmem:[#allocation8 + $0x10] sm:$0xff]  ;;  %v2800_v50 = vld [vmem:[#allocation8 + $0x18] sm:$0xff] }
 0x368   :  { %v4709_v45 = vpack.c.bf16 %v2811_v44, %v2808_v41 }
 0x369   :  { %v1278_v55 = vsub.f32 %v1276_v0, %v1277_v51  ;;  %v1288_v56 = vsub.f32 %v1286_v1, %v1287_v52  ;;  %v1817_v57 = vand.u32 4294901760, %v1816_v53  ;;  %v1827_v58 = vand.u32 4294901760, %v1826_v54 }
 0x36b   :  { %v1279_v59 = vand.u32 4294901760, %v1278_v55  ;;  %v1289_v60 = vand.u32 4294901760, %v1288_v56  ;;  %v1818_v61 = vsub.f32 %v1816_v53, %v1817_v57  ;;  %v1828_v62 = vsub.f32 %v1826_v54, %v1827_v58 }
 0x36d   :  { %3702 = vmatprep.mubr.f32.mxu1 %v1279_v59  ;;  %v1819_v2 = vand.u32 4294901760, %v1818_v61  ;;  %v1829_v3 = vand.u32 4294901760, %v1828_v62 }
 0x36e   :  { %3703 = vmatmul.mubr.f32.vlgmr.msra.gmra.mrb[6].mxu1 %v1289_v60 }
 0x36f   :  { %4013 = vmatpush3.bf16.msra.mxu1 %v4617_v63  ;;  %3713 = vmatprep.mubr.f32.mxu1 %v4638_v47 }
 0x370   :  { %3768 = vmatprep.mubr.f32.mxu0 %v1819_v2  ;;  %4015 = vmatprep.subr.bf16.mxu1 %v4014_v20 }
 0x371   :  { %3769 = vmatmul.mubr.f32.vlgmr.msra.gmra.mrb[2].mxu0 %v1829_v3 }
 0x372   :  { %4061 = vmatpush3.bf16.msra.mxu0 %v4058_v12  ;;  %3779 = vmatprep.mubr.f32.mxu0 %v4646_v6 }
 0x373   :  { %4017 = vmatpush3.bf16.msra.mxu1 %v4014_v20  ;;  %4063 = vmatprep.subr.bf16.mxu0 %v4062_v24 }
 0x374   :  { %4019 = vmatprep.subr.bf16.mxu1 %v4018_v25 }
 0x376   :  { %4065 = vmatpush3.bf16.msra.mxu0 %v4062_v24  ;;  %3714 = vmatmul.mubr.f32.vlgmr.msra.gmra.mrb[6].mxu1 %v4640_v48 }
 0x377   :  { %4021 = vmatpush3.bf16.msra.mxu1 %v4018_v25  ;;  %3724 = vmatprep.mubr.f32.mxu1 %v1276_v0  ;;  %v2814_v0 = vand.u32 4294901760, %v2799_v49 }
 0x378   :  { %4067 = vmatprep.subr.bf16.mxu0 %v4066_v26  ;;  %4023 = vmatprep.subr.bf16.mxu1 %v4620_v27 }
 0x379   :  { %3780 = vmatmul.mubr.f32.vlgmr.msra.gmra.mrb[2].mxu0 %v4648_v5 }
 0x37a   :  { %4069 = vmatpush3.bf16.msra.mxu0 %v4066_v26  ;;  %3790 = vmatprep.mubr.f32.mxu0 %v1816_v53 }
 0x37b   :  { %4025 = vmatpush3.bf16.msra.mxu1 %v4620_v27  ;;  %4071 = vmatprep.subr.bf16.mxu0 %v4622_v28 }
 0x37c   :  { %4027 = vmatprep.subr.bf16.mxu1 %v4601_v39 }
 0x37e   :  { %4073 = vmatpush3.bf16.msra.mxu0 %v4622_v28  ;;  %3725 = vmatmul.mubr.f32.vlgmr.msra.gmra.mrb[6].mxu1 %v1286_v1  ;;  %v2817_v1 = vand.u32 4294901760, %v2800_v50 }
 0x37f   :  { %4029 = vmatpush3.bf16.msra.mxu1 %v4601_v39  ;;  %3735 = vmatprep.mubr.f32.mxu1 %v1277_v51 }
 0x380   :  { %4075 = vmatprep.subr.bf16.mxu0 %v4603_v42  ;;  %4031 = vmatprep.subr.bf16.mxu1 %v4605_v43  ;;  %v4713_v51 = vpack.c.bf16 %v2817_v1, %v2814_v0  ;;  %v2919_v55 = vsub.f32 %v2800_v50, %v2817_v1 }
 0x381   :  { %3791 = vmatmul.mubr.f32.vlgmr.msra.gmra.mrb[2].mxu0 %v1826_v54  ;;  %v2912_v54 = vsub.f32 %v2799_v49, %v2814_v0 }
 0x382   :  { %4077 = vmatpush3.bf16.msra.mxu0 %v4603_v42  ;;  %3801 = vmatprep.mubr.f32.mxu0 %v1817_v57  ;;  %v2920_v59 = vand.u32 4294901760, %v2919_v55 }
 0x383   :  { %4033 = vmatpush3.bf16.msra.mxu1 %v4605_v43  ;;  %4079 = vmatprep.subr.bf16.mxu0 %v4608_v46 }
 0x384   :  { %4035 = vmatprep.subr.bf16.mxu1 %v4624_v29  ;;  %v2921_v62 = vsub.f32 %v2919_v55, %v2920_v59 }
 0x386   :  { %4081 = vmatpush3.bf16.msra.mxu0 %v4608_v46  ;;  %3736 = vmatmul.mubr.f32.vlgmr.msra.gmra.mrb[6].mxu1 %v1287_v52  ;;  %v2922_v3 = vand.u32 4294901760, %v2921_v62 }
 0x387   :  { %4037 = vmatpush3.bf16.msra.mxu1 %v4624_v29  ;;  %3746 = vmatprep.mubr.f32.mxu1 %v4638_v47 }
 0x388   :  { %4083 = vmatprep.subr.bf16.mxu0 %v4626_v30  ;;  %4039 = vmatprep.subr.bf16.mxu1 %v4628_v31 }
 0x389   :  { %3802 = vmatmul.mubr.f32.vlgmr.msra.gmra.mrb[2].mxu0 %v1827_v58  ;;  %v2913_v58 = vand.u32 4294901760, %v2912_v54 }
 0x38a   :  { %4085 = vmatpush3.bf16.msra.mxu0 %v4626_v30  ;;  %3812 = vmatprep.mubr.f32.mxu0 %v4646_v6 }
 0x38b   :  { %4041 = vmatpush3.bf16.msra.mxu1 %v4628_v31  ;;  %4087 = vmatprep.subr.bf16.mxu0 %v4630_v32  ;;  %v2914_v61 = vsub.f32 %v2912_v54, %v2913_v58 }
 0x38c   :  { %4043 = vmatprep.subr.bf16.mxu1 %v4601_v39 }
 0x38d   :  { %v2915_v2 = vand.u32 4294901760, %v2914_v61 }
 0x38e   :  { %4089 = vmatpush3.bf16.msra.mxu0 %v4630_v32  ;;  %3747 = vmatmul.mubr.f32.vlgmr.msra.gmra.mrb[6].mxu1 %v4640_v48 }
 0x38f   :  { %4045 = vmatpush3.bf16.msra.mxu1 %v4601_v39  ;;  %3757 = vmatprep.mubr.f32.mxu1 %v4638_v47  ;;  %v2294_v39 = vld [vmem:[%s4750_s6] sm:$0xf]  ;;  %v2898_v47 = vsub.f32 %v2797_v38, %v2808_v41  ;;  %s4353_s6 = smov [#allocation10]  }
 0x390   :  { %4091 = vmatprep.subr.bf16.mxu0 %v4603_v42  ;;  %4047 = vmatprep.subr.bf16.mxu1 %v4605_v43  ;;  %v2304_v63 = vsel %vm2302_vm2, %v2294_v39, 0  ;;  %v4110_v39 = vpack.c.bf16 %v2922_v3, %v2915_v2  ;;  %s3342_s26 = sshll.u32 %s4353_s6, 4  ;;  %s3343_s26 = int_to_ptr.vmem [resolvable:$true] %s3342_s26 }
 0x391   :  { %3813 = vmatmul.mubr.f32.vlgmr.msra.gmra.mrb[2].mxu0 %v4648_v5  ;;  %v4696_v4 = vand.u32 4294901760, %v2304_v63  ;;  %s4314_s27 = scalar_lea.vmem %s3343_s26, 256  ;;  %p4319_p5 = scmp.lt.s32.totalorder %s3343_s26, %s3343_s26 }
 0x392   :  { %4093 = vmatpush3.bf16.msra.mxu0 %v4603_v42  ;;  %3823 = vmatprep.mubr.f32.mxu0 %v4646_v6  ;;  %v2899_v6 = vand.u32 4294901760, %v2898_v47  ;;  %p4315_p4 = scmp.ne.s32.totalorder %s3343_s26, %s4314_s27  ;;  %p4320_p6 = scmp.lt.s32.totalorder %s4314_s27, %s4314_s27 }
 0x393   :  { %4049 = vmatpush3.bf16.msra.mxu1 %v4605_v43  ;;  %4095 = vmatprep.subr.bf16.mxu0 %v4608_v46  ;;  %v2394_v42 = vsub.f32 %v2304_v63, %v4696_v4 }
 0x394   :  { %3826 = vmatprep.subr.mxu1 %v4696_v4  ;;  %v2900_v52 = vsub.f32 %v2898_v47, %v2899_v6  ;;  %p4321_p7 = por %p4320_p6, %p4319_p5 }
 0x395   :  { %v2395_v43 = vand.u32 4294901760, %v2394_v42 }
 0x396   :  { %4097 = vmatpush3.bf16.msra.mxu0 %v4608_v46  ;;  %3758 = vmatmul.mubr.f32.vlgmr.msra.gmra.mrb[6].mxu1 %v4640_v48  ;;  %v2905_v48 = vsub.f32 %v2798_v40, %v2811_v44  ;;  %v2901_v56 = vand.u32 4294901760, %v2900_v52  ;;  %p4322_p8 = pnand %p4321_p7, %p4315_p4 }
 0x397   :  { %3827 = vmatpush3.msra.mxu1 %v4696_v4  ;;  %v2396_v46 = vsub.f32 %v2394_v42, %v2395_v43  ;;  %4099 = vmatprep.subr.bf16.mxu0 %v4709_v45 }
 0x398   :  { %v4114_v63 = vpack.c.bf16 %v2905_v48, %v2898_v47 }
 0x399   :  { %3824 = vmatmul.mubr.f32.vlgmr.msra.gmra.mrb[2].mxu0 %v4648_v5  ;;  %v2397_v7 = vand.u32 4294901760, %v2396_v46  ;;  %v2906_v5 = vand.u32 4294901760, %v2905_v48 }
 0x39a   :  { %4101 = vmatpush3.bf16.msra.mxu0 %v4709_v45 }
 0x39b   :  { %3831 = vmatprep.subr.mxu1 %v2397_v7  ;;  %v2907_v53 = vsub.f32 %v2905_v48, %v2906_v5  ;;  %4103 = vmatprep.subr.bf16.mxu0 %v4713_v51 }
 0x39d   :  { %v2908_v57 = vand.u32 4294901760, %v2907_v53 }
 0x39e   :  { %4105 = vmatpush3.bf16.msra.mxu0 %v4713_v51 }
 0x39f   :  { %v4106_v60 = vpack.c.bf16 %v2908_v57, %v2901_v56 }
 0x3a1   :  { %4107 = vmatprep.subr.bf16.mxu0 %v4106_v60 }
 0x469   :  { %v4701_v8 = vpop.f32.mrb[6].mxu1 }
 0x46a   :  { %v4703_v9 = vpop.f32.mrb[7].mxu1 }
 0x46c   :  { %v3825_v10 = vpop.f32.mrb[2].mxu0 }
 0x46d   :  { %4218 = vrsqrt.f32 %v3825_v10  ;;  %v2264_v11 = vpop.f32.mrb[3].mxu0  ;;  %vm2283_vm3 = vcmp.eq.f32.partialorder %v3825_v10, inf  ;;  %v2286_v17 = vand.u32 2147483648, %v3825_v10  ;;  %vm2285_vm4 = vcmp.eq.f32.partialorder %v3825_v10, 0.0 }
 0x46e   :  { %4220 = vrsqrt.f32 %v2264_v11  ;;  %vm2276_vm5 = vcmp.eq.f32.partialorder %v2264_v11, inf  ;;  %v2279_v22 = vand.u32 2147483648, %v2264_v11  ;;  %vm2278_vm6 = vcmp.eq.f32.partialorder %v2264_v11, 0.0 }
 0x477   :  { %v4219_v12 = vpop.eup %4218 }
 0x478   :  { %v4221_v13 = vpop.eup %4220  ;;  %v2282_v16 = vmul.f32 %v4219_v12, %v3825_v10 }
 0x479   :  { %v2275_v19 = vmul.f32 %v4221_v13, %v2264_v11 }
 0x47a   :  { %v2284_v20 = vsel %vm2283_vm3, %v3825_v10, %v2282_v16 }
 0x47b   :  { %v2287_v23 = vsel %vm2285_vm4, %v2286_v17, %v2284_v20  ;;  %v2277_v24 = vsel %vm2276_vm5, %v2264_v11, %v2275_v19 }
 0x47c   :  { %v2289_v25 = vmax.f32 %v2287_v23, 1e-12  ;;  %v2280_v26 = vsel %vm2278_vm6, %v2279_v22, %v2277_v24 }
 0x47d   :  { %v2288_v27 = vmax.f32 %v2280_v26, 1e-12 }
 0x47e   :  { %4222 = vrcp.f32 %v2289_v25 }
 0x47f   :  { %4224 = vrcp.f32 %v2288_v27 }
 0x488   :  { %v4223_v28 = vpop.eup %4222 }
 0x489   :  { %v4225_v29 = vpop.eup %4224  ;;  %v2300_v30 = vsel %vm2295_vm7, %v4223_v28, 0 }
 0x48a   :  { %v2297_v31 = vsel %vm2295_vm7, %v4225_v29, 0  ;;  %v2382_v32 = vand.u32 4294901760, %v2300_v30 }
 0x48b   :  { %v2372_v33 = vand.u32 4294901760, %v2297_v31 }
 0x48c   :  { %v2383_v15 = vsub.f32 %v2300_v30, %v2382_v32 }
 0x48d   :  { %v2373_v34 = vsub.f32 %v2297_v31, %v2372_v33 }
 0x48e   :  { %v2384_v35 = vand.u32 4294901760, %v2383_v15 }
 0x48f   :  { %v2374_v18 = vand.u32 4294901760, %v2373_v34 }
 0x490   :  { %v2385_v36 = vsub.f32 %v2383_v15, %v2384_v35 }
 0x491   :  { %v2375_v14 = vsub.f32 %v2373_v34, %v2374_v18 }
 0x492   :  { %v2386_v21 = vand.u32 4294901760, %v2385_v36 }
 0x493   :  { %v2376_v37 = vand.u32 4294901760, %v2375_v14 }
 0x495   :  { %3828 = vmatprep.mubr.f32.mxu1 %v2376_v37 }
 0x496   :  { %3829 = vmatmul.mubr.f32.vlgmr.msra.gmra.mrb[8].mxu1 %v2386_v21 }
 0x497   :  { %3832 = vmatpush3.msra.mxu1 %v2397_v7  ;;  %3833 = vmatprep.mubr.f32.mxu1 %v2372_v33 }
 0x498   :  { %3836 = vmatprep.subr.mxu1 %v2394_v42 }
 0x49e   :  { %3834 = vmatmul.mubr.f32.vlgmr.msra.gmra.mrb[8].mxu1 %v2382_v32 }
 0x49f   :  { %3837 = vmatpush3.msra.mxu1 %v2394_v42  ;;  %3838 = vmatprep.mubr.f32.mxu1 %v2373_v34  ;;  %v4130_v42 = vpack.c.bf16 %v2906_v5, %v2899_v6 }
 0x4a0   :  { %3841 = vmatprep.subr.mxu1 %v4696_v4 }
 0x4a6   :  { %3839 = vmatmul.mubr.f32.vlgmr.msra.gmra.mrb[8].mxu1 %v2383_v15 }
 0x4a7   :  { %3842 = vmatpush3.msra.mxu1 %v4696_v4  ;;  %3843 = vmatprep.mubr.f32.mxu1 %v2374_v18 }
 0x4a8   :  { %3846 = vmatprep.subr.mxu1 %v2395_v43 }
 0x4ae   :  { %3844 = vmatmul.mubr.f32.vlgmr.msra.gmra.mrb[8].mxu1 %v2384_v35 }
 0x4af   :  { %3847 = vmatpush3.msra.mxu1 %v2395_v43  ;;  %3848 = vmatprep.mubr.f32.mxu1 %v2372_v33  ;;  %v4134_v43 = vpack.c.bf16 %v2920_v59, %v2913_v58 }
 0x4b0   :  { %3851 = vmatprep.subr.mxu1 %v4696_v4 }
 0x4b6   :  { %3849 = vmatmul.mubr.f32.vlgmr.msra.gmra.mrb[8].mxu1 %v2382_v32 }
 0x4b7   :  { %3852 = vmatpush3.msra.mxu1 %v4696_v4  ;;  %3853 = vmatprep.mubr.f32.mxu1 %v2372_v33  ;;  %v4118_v4 = vpack.c.bf16 %v2919_v55, %v2912_v54 }
 0x4be   :  { %3854 = vmatmul.mubr.f32.vlgmr.msra.gmra.mrb[8].mxu1 %v2382_v32 }
 0x591   :  { %v3855_v46 = vpop.f32.mrb[8].mxu1 }
 0x592   :  { %v2796_v7 = vmul.f32 %v3855_v46, %v4701_v8  ;;  %v2785_v10 = vpop.f32.mrb[9].mxu1 }
 0x593   :  { %v2795_v11 = vmul.f32 %v2785_v10, %v4703_v9 }
 0x594   :  { %v2805_v12 = vsel %vm98_vm0, %v2796_v7, 0 }
 0x595   :  { %v2886_v13 = vand.u32 4294901760, %v2805_v12  ;;  %v2802_v16 = vsel %vm98_vm0, %v2795_v11, 0 }
 0x596   :  { %v2876_v17 = vand.u32 4294901760, %v2802_v16 }
 0x597   :  { %v2887_v19 = vsub.f32 %v2805_v12, %v2886_v13 }
 0x598   :  { %v2877_v20 = vsub.f32 %v2802_v16, %v2876_v17 }
 0x599   :  { %v2888_v22 = vand.u32 4294901760, %v2887_v19 }
 0x59a   :  { %v2878_v23 = vand.u32 4294901760, %v2877_v20 }
 0x59b   :  { %v2889_v24 = vsub.f32 %v2887_v19, %v2888_v22 }
 0x59c   :  { %v2879_v25 = vsub.f32 %v2877_v20, %v2878_v23 }
 0x59d   :  { %v2890_v27 = vand.u32 4294901760, %v2889_v24 }
 0x59e   :  { %v2880_v26 = vand.u32 4294901760, %v2879_v25 }
 0x5a0   :  { %3864 = vmatprep.mubr.f32.mxu0 %v2880_v26 }
 0x5a1   :  { %3865 = vmatmul.mubr.f32.vlgmr.msra.gmra.mrb[4].mxu0 %v2890_v27 }
 0x5a2   :  { %4109 = vmatpush3.bf16.msra.mxu0 %v4106_v60  ;;  %3875 = vmatprep.mubr.f32.mxu0 %v2876_v17 }
 0x5a3   :  { %4111 = vmatprep.subr.bf16.mxu0 %v4110_v39 }
 0x5a6   :  { %4113 = vmatpush3.bf16.msra.mxu0 %v4110_v39 }
 0x5a7   :  { %4115 = vmatprep.subr.bf16.mxu0 %v4114_v63 }
 0x5a9   :  { %3876 = vmatmul.mubr.f32.vlgmr.msra.gmra.mrb[4].mxu0 %v2886_v13 }
 0x5aa   :  { %4117 = vmatpush3.bf16.msra.mxu0 %v4114_v63  ;;  %3886 = vmatprep.mubr.f32.mxu0 %v2877_v20 }
 0x5ab   :  { %4119 = vmatprep.subr.bf16.mxu0 %v4118_v4 }
 0x5ae   :  { %4121 = vmatpush3.bf16.msra.mxu0 %v4118_v4 }
 0x5af   :  { %4123 = vmatprep.subr.bf16.mxu0 %v4709_v45 }
 0x5b1   :  { %3887 = vmatmul.mubr.f32.vlgmr.msra.gmra.mrb[4].mxu0 %v2887_v19 }
 0x5b2   :  { %4125 = vmatpush3.bf16.msra.mxu0 %v4709_v45  ;;  %3897 = vmatprep.mubr.f32.mxu0 %v2878_v23 }
 0x5b3   :  { %4127 = vmatprep.subr.bf16.mxu0 %v4713_v51 }
 0x5b6   :  { %4129 = vmatpush3.bf16.msra.mxu0 %v4713_v51 }
 0x5b7   :  { %4131 = vmatprep.subr.bf16.mxu0 %v4130_v42 }
 0x5b9   :  { %3898 = vmatmul.mubr.f32.vlgmr.msra.gmra.mrb[4].mxu0 %v2888_v22 }
 0x5ba   :  { %4133 = vmatpush3.bf16.msra.mxu0 %v4130_v42  ;;  %3908 = vmatprep.mubr.f32.mxu0 %v2876_v17 }
 0x5bb   :  { %4135 = vmatprep.subr.bf16.mxu0 %v4134_v43 }
 0x5be   :  { %4137 = vmatpush3.bf16.msra.mxu0 %v4134_v43 }
 0x5bf   :  { %4139 = vmatprep.subr.bf16.mxu0 %v4709_v45 }
 0x5c1   :  { %3909 = vmatmul.mubr.f32.vlgmr.msra.gmra.mrb[4].mxu0 %v2886_v13 }
 0x5c2   :  { %4141 = vmatpush3.bf16.msra.mxu0 %v4709_v45  ;;  %3919 = vmatprep.mubr.f32.mxu0 %v2876_v17 }
 0x5c3   :  { %4143 = vmatprep.subr.bf16.mxu0 %v4713_v51 }
 0x5c6   :  { %4145 = vmatpush3.bf16.msra.mxu0 %v4713_v51 }
 0x5c9   :  { %3920 = vmatmul.mubr.f32.vlgmr.msra.gmra.mrb[4].mxu0 %v2886_v13 }
 0x69c   :  { %v3921_v8 = vpop.f32.mrb[4].mxu0 }
 0x69d   :  { %3336 = vst [vmem:[#allocation10 + $0x8] sm:$0xff] %v3921_v8  ;;  %v3325_v9 = vpop.f32.mrb[5].mxu0 }
 0x69e   :  { %3335 = vst [vmem:[#allocation10] sm:$0xff] %v3325_v9 }
 0x69f   :  { %4325 = shalt.err (!%p4322_p8)
}
 0x6a0   :  { %s4326_s28 = scalar_lea.hbm %s4752_s8, 256 }
 0x6a1   :  { %p4327_p9 = scmp.ne.s32.totalorder %s4752_s8, %s4326_s28  ;;  %p4330_p10 = scmp.lt.u32.totalorder %s4326_s28, %s4752_s8 }
 0x6a3   :  { %p4332_p11 = pnand %p4330_p10, %p4327_p9 }
 0x6a5   :  { %4335 = shalt.err (!%p4332_p11)
}
 0x6a6   :  { %3348 = dma.vmem_to_hbm [thread:$0]  %s3343_s26, 256, %s4752_s8, [#allocation4], %s4346_s17, %s4346_s17, %s4347_s18  }
 0x6a7   :  { %4342 = dma.done.wait [#allocation4], 256  }
 0x6a8   :  { %4343 = vsyncadd [#allocation4], 4294967040 }
 0x6a9   :  { %3352 = vsyncpa [#allocation3], 1 }
 0x6aa   :  { %3353 = vsyncpa [#allocation6], 1 }
 0x6ab   :  { %3354 = vsyncpa [#allocation9], 1 }
 0x6ac   :  { %3355 = vsyncpa [#allocation4], 1 }

</bundles_post_ra>
